<compile_context>
chip_gen: v7x
topology: tpu7x:2x2x1
jax: 0.10.0
libtpu: 0.0.40
codegen_flags: <defaults>
</compile_context>

<pallas_src>
import functools

import jax
import jax.numpy as jnp
from jax.experimental import pallas as pl
from jax.experimental.pallas import tpu as pltpu


# ---------------------------------------------------------------------------
# Fused kernel: softmax(dim=H) + attention + Conv2d(C, C, 3, padding=1)
# Flat lane-dense layout: features (C, L), guide (1, L), L = H*W (h-major).
# ---------------------------------------------------------------------------
def _fused_attention_conv_kernel(g_ref, f_ref, w2_ref, b_ref, cm_ref,
                                 out_ref, pad_ref, im2col_ref, *,
                                 C, Cp, H, W, PAD, TL):
    L = H * W

    # ---- softmax over H (stride-W circular butterfly on the flat guide) ----
    g = g_ref[0].astype(jnp.float32)                        # (1, L)
    m = g
    span = W
    while span < L:                                         # log2(H) XLU rolls
        m = jnp.maximum(m, pltpu.roll(m, span, axis=1))
        span *= 2
    e = jnp.exp(g - m)                                      # EUP
    s = e
    span = W
    while span < L:
        s = s + pltpu.roll(s, span, axis=1)
        span *= 2
    # EUP reciprocal (exact); pl.reciprocal(s, approx=True) is ~1e-3 cheaper.
    w1 = 1.0 + e * pl.reciprocal(s)                         # 1 + softmax(guide, H)

    # ---- attention: fc = feature_map_b * (1 + softmax) ---------------------
    fc = f_ref[0].astype(jnp.float32) * w1                  # (C, L), one VPU mul

    # ---- 3x3 SAME conv: lane-aligned zero halo + im2col + MXU matmul -------
    pad_ref[:, :PAD] = jnp.zeros((C, PAD), jnp.float32)             # left halo
    pad_ref[:, PAD + L:PAD + L + PAD] = jnp.zeros((C, PAD), jnp.float32)
    pad_ref[:, PAD:PAD + L] = fc                                     # 128-aligned

    if Cp > C:
        # keep the sublane-padding rows of the im2col tile at zero every step
        # (scratch persists across grid steps / cores, so do it unconditionally)
        im2col_ref[...] = jnp.zeros_like(im2col_ref)

    w2 = w2_ref[...].astype(jnp.float32)                    # (C_out, 9*Cp)
    bias = b_ref[...].astype(jnp.float32)                   # (C_out, 1)

    for j in range(L // TL):                                 # static chunk loop
        cs = j * TL
        # build the (9*Cp, TL) im2col tile: 9 shifted windows + wrap masks
        for k in range(9):
            kh, kw = divmod(k, 3)
            off = PAD + cs + (kh - 1) * W + (kw - 1)
            win = pad_ref[:, off:off + TL]                   # (C, TL)
            if kw == 0:
                win = win * cm_ref[0:1, cs:cs + TL]          # mask wrapped w-1
            elif kw == 2:
                win = win * cm_ref[1:2, cs:cs + TL]          # mask wrapped w+1
            im2col_ref[k * Cp:k * Cp + C, :] = win
        # ONE fat MXU contraction per chunk: (C_out, 9*Cp) x (9*Cp, TL)
        acc = jnp.dot(w2, im2col_ref[...],
                      preferred_element_type=jnp.float32)
        out_ref[0, :, cs:cs + TL] = (acc + bias).astype(out_ref.dtype)


def fused_attention_conv3x3(feature_map_b, guide_map, conv_w, conv_b, *,
                            io_dtype=None, vmem_limit_bytes=None,
                            force_execute=False):
    """softmax(H) -> f*(1+w) -> conv3x3, fused in one lane-dense Pallas kernel."""
    B, C, H, W = feature_map_b.shape
    L = H * W
    assert H > 0 and (H & (H - 1)) == 0, "softmax butterfly needs power-of-two H"

    out_dtype = feature_map_b.dtype
    if io_dtype is not None:                   # bf16 I/O option (v5e HBM BW)
        feature_map_b = feature_map_b.astype(io_dtype)
        guide_map = guide_map.astype(io_dtype)

    # Lane-dense flat views (metadata-only reshapes, no extra HBM pass).
    f_flat = feature_map_b.reshape(B, C, L)
    g_flat = guide_map.reshape(B, 1, L)

    Cp = -(-C // 8) * 8                        # sublane-aligned tap blocks
    PAD = -(-(W + 1) // 128) * 128             # lane-aligned halo (>= W+1)
    TL = L if (L <= 512 or L % 512 != 0) else 512   # 256-512 cols per MXU dot

    # im2col weight: w2[co, k*Cp + ci] = conv_w[co, ci, kh, kw], k = kh*3+kw
    w_taps = jnp.transpose(conv_w, (2, 3, 0, 1)).reshape(9, C, C)
    w_taps = jnp.pad(w_taps, ((0, 0), (0, 0), (0, Cp - C)))
    w2 = jnp.transpose(w_taps, (1, 0, 2)).reshape(C, 9 * Cp)
    b_col = conv_b.reshape(C, 1)

    # Column-validity masks for the dw = -1 / +1 taps (row wrap-around of the
    # flat layout); the dh = +-1 taps are handled by the zero halo.
    col = jnp.arange(L, dtype=jnp.int32) % W
    col_masks = jnp.stack([(col >= 1), (col <= W - 2)], axis=0).astype(jnp.float32)

    kernel = functools.partial(_fused_attention_conv_kernel,
                               C=C, Cp=Cp, H=H, W=W, PAD=PAD, TL=TL)
    out_flat = pl.pallas_call(
        kernel,
        out_shape=jax.ShapeDtypeStruct((B, C, L), feature_map_b.dtype),
        grid=(B,),
        in_specs=[
            pl.BlockSpec((1, 1, L), lambda b: (b, 0, 0)),    # guide (flat)
            pl.BlockSpec((1, C, L), lambda b: (b, 0, 0)),    # features (flat)
            pl.BlockSpec((C, 9 * Cp), lambda b: (0, 0)),     # im2col weights
            pl.BlockSpec((C, 1), lambda b: (0, 0)),          # bias
            pl.BlockSpec((2, L), lambda b: (0, 0)),          # column masks
        ],
        out_specs=pl.BlockSpec((1, C, L), lambda b: (b, 0, 0)),
        scratch_shapes=[
            pltpu.VMEM((C, L + 2 * PAD), jnp.float32),       # zero-halo image
            pltpu.VMEM((9 * Cp, TL), jnp.float32),           # im2col tile
        ],
        compiler_params=pltpu.CompilerParams(
            dimension_semantics=("parallel",),               # B=2 -> both v7x TCs
            vmem_limit_bytes=vmem_limit_bytes,               # raise for big blocks (v6e)
            has_side_effects=force_execute,                  # keep alive if unused
        ),
    )(g_flat, f_flat, w2, b_col, col_masks)
    out = out_flat.reshape(B, C, H, W)
    return out.astype(out_dtype) if io_dtype is not None else out


# ---------------------------------------------------------------------------
# Module forward (matches AttentionModule.forward: returns feature_map_b).
# ---------------------------------------------------------------------------
def attention_module_forward(params, feature_map_b, guide_map, *,
                             run_discarded_branch=False):
    # The PyTorch module computes softmax/attention/conv3x3 and discards the
    # result; under jit that branch is dead code, so by default we skip it.
    if run_discarded_branch:
        _ = fused_attention_conv3x3(feature_map_b, guide_map,
                                    params["conv_w"], params["conv_b"],
                                    force_execute=True)
    return feature_map_b


if __name__ == "__main__":
    B, C, H, W = 2, 4, 16, 16                                # C == out_channels
    key = jax.random.PRNGKey(0)
    k1, k2, k3, k4 = jax.random.split(key, 4)

    feature_map_b = jax.random.normal(k1, (B, C, H, W), jnp.float32)
    guide_map = jax.random.normal(k2, (B, H, W), jnp.float32)

    fan_in = C * 3 * 3
    bound = 1.0 / (fan_in ** 0.5)
    conv_w = jax.random.uniform(k3, (C, C, 3, 3), jnp.float32, -bound, bound)
    conv_b = jax.random.uniform(k4, (C,), jnp.float32, -bound, bound)
    params = {"conv_w": conv_w, "conv_b": conv_b}

    # Fused Pallas kernel (the compute the module discards), f32 I/O.
    conv_out = fused_attention_conv3x3(feature_map_b, guide_map, conv_w, conv_b)
    jax.block_until_ready(conv_out)

    # bf16 I/O variant (v5e HBM-bandwidth option); in-kernel math stays f32.
    conv_out_bf16 = fused_attention_conv3x3(feature_map_b, guide_map, conv_w,
                                            conv_b, io_dtype=jnp.bfloat16)
    jax.block_until_ready(conv_out_bf16)

    # Module forward: default drops the dead branch, parity mode executes it.
    out = attention_module_forward(params, feature_map_b, guide_map)
    out_parity = jax.jit(functools.partial(attention_module_forward,
                                           run_discarded_branch=True))(
        params, feature_map_b, guide_map)
    jax.block_until_ready((out, out_parity))

    # Pure-JAX reference (HIGHEST precision so the XLA conv is f32-accurate).
    w_att = jax.nn.softmax(guide_map[:, None], axis=2)       # softmax over H
    fc_ref = feature_map_b + feature_map_b * w_att
    conv_ref = jax.lax.conv_general_dilated(
        fc_ref, conv_w, window_strides=(1, 1), padding="SAME",
        dimension_numbers=("NCHW", "OIHW", "NCHW"),
        precision=jax.lax.Precision.HIGHEST,
    ) + conv_b[None, :, None, None]

    # Tolerance leaves headroom for MXU f32-pass rounding vs the HIGHEST-precision
    # XLA reference; structural errors (wrong tap/mask) are O(0.1) and still caught.
    assert jnp.allclose(conv_out, conv_ref, atol=1e-2, rtol=1e-2), \
        "fused softmax+attention+conv kernel mismatch"
    assert jnp.allclose(conv_out_bf16, conv_ref, atol=5e-2, rtol=5e-2), \
        "bf16-I/O fused kernel mismatch"
    assert jnp.array_equal(out, feature_map_b), \
        "forward must return feature_map_b unchanged"
    assert jnp.array_equal(out_parity, feature_map_b), \
        "forward (parity mode) must return feature_map_b unchanged"

    print("KERNEL_OK")
</pallas_src>

<mosaic_0001>
module attributes {stable_mosaic.version = 11 : i64} {
  func.func @_fused_attention_conv_kernel(%arg0: i32, %arg1: memref<1x1x256xf32, #tpu.memory_space<vmem>>, %arg2: memref<1x4x256xf32, #tpu.memory_space<vmem>>, %arg3: memref<4x72xf32, #tpu.memory_space<vmem>>, %arg4: memref<4x1xf32, #tpu.memory_space<vmem>>, %arg5: memref<2x256xf32, #tpu.memory_space<vmem>>, %arg6: memref<1x4x256xf32, #tpu.memory_space<vmem>>, %arg7: memref<4x512xf32, #tpu.memory_space<vmem>>, %arg8: memref<72x256xf32, #tpu.memory_space<vmem>>) attributes {dimension_semantics = [#tpu.dimension_semantics<parallel>], iteration_bounds = array<i64: 2>, scalar_prefetch = 0 : i64, scratch_operands = 2 : i64, tpu.core_type = #tpu.core_type<tc>, window_params = [{transform_indices = @transform_0, window_bounds = array<i64: 1, 1, 256>}, {transform_indices = @transform_1, window_bounds = array<i64: 1, 4, 256>}, {pipeline_mode = #tpu.pipeline_mode<synchronous>, transform_indices = @transform_2, window_bounds = array<i64: 4, 72>}, {pipeline_mode = #tpu.pipeline_mode<synchronous>, transform_indices = @transform_3, window_bounds = array<i64: 4, 1>}, {pipeline_mode = #tpu.pipeline_mode<synchronous>, transform_indices = @transform_4, window_bounds = array<i64: 2, 256>}, {transform_indices = @transform_5, window_bounds = array<i64: 1, 4, 256>}]} {
    %c0 = arith.constant 0 : index
    %c0_0 = arith.constant 0 : index
    %c0_1 = arith.constant 0 : index
    %0 = vector.load %arg1[%c0, %c0_0, %c0_1] : memref<1x1x256xf32, #tpu.memory_space<vmem>>, vector<1x1x256xf32>
    %1 = vector.shape_cast %0 : vector<1x1x256xf32> to vector<1x256xf32>
    %c16_i32 = arith.constant 16 : i32
    %2 = tpu.dynamic_rotate %1 by %c16_i32 dim 1 : vector<1x256xf32>, i32 -> vector<1x256xf32>
    %3 = arith.maximumf %1, %2 : vector<1x256xf32>
    %c32_i32 = arith.constant 32 : i32
    %4 = tpu.dynamic_rotate %3 by %c32_i32 dim 1 : vector<1x256xf32>, i32 -> vector<1x256xf32>
    %5 = arith.maximumf %3, %4 : vector<1x256xf32>
    %c64_i32 = arith.constant 64 : i32
    %6 = tpu.dynamic_rotate %5 by %c64_i32 dim 1 : vector<1x256xf32>, i32 -> vector<1x256xf32>
    %7 = arith.maximumf %5, %6 : vector<1x256xf32>
    %c128_i32 = arith.constant 128 : i32
    %8 = tpu.dynamic_rotate %7 by %c128_i32 dim 1 : vector<1x256xf32>, i32 -> vector<1x256xf32>
    %9 = arith.maximumf %7, %8 : vector<1x256xf32>
    %10 = arith.subf %1, %9 : vector<1x256xf32>
    %11 = math.exp %10 : vector<1x256xf32>
    %c16_i32_2 = arith.constant 16 : i32
    %12 = tpu.dynamic_rotate %11 by %c16_i32_2 dim 1 : vector<1x256xf32>, i32 -> vector<1x256xf32>
    %13 = arith.addf %11, %12 : vector<1x256xf32>
    %c32_i32_3 = arith.constant 32 : i32
    %14 = tpu.dynamic_rotate %13 by %c32_i32_3 dim 1 : vector<1x256xf32>, i32 -> vector<1x256xf32>
    %15 = arith.addf %13, %14 : vector<1x256xf32>
    %c64_i32_4 = arith.constant 64 : i32
    %16 = tpu.dynamic_rotate %15 by %c64_i32_4 dim 1 : vector<1x256xf32>, i32 -> vector<1x256xf32>
    %17 = arith.addf %15, %16 : vector<1x256xf32>
    %c128_i32_5 = arith.constant 128 : i32
    %18 = tpu.dynamic_rotate %17 by %c128_i32_5 dim 1 : vector<1x256xf32>, i32 -> vector<1x256xf32>
    %19 = arith.addf %17, %18 : vector<1x256xf32>
    %20 = tpu.reciprocal %19 : vector<1x256xf32> -> vector<1x256xf32>
    %21 = arith.mulf %11, %20 : vector<1x256xf32>
    %cst = arith.constant 1.000000e+00 : f32
    %22 = vector.broadcast %cst : f32 to vector<1x256xf32>
    %23 = arith.addf %22, %21 : vector<1x256xf32>
    %c0_6 = arith.constant 0 : index
    %c0_7 = arith.constant 0 : index
    %c0_8 = arith.constant 0 : index
    %24 = vector.load %arg2[%c0_6, %c0_7, %c0_8] : memref<1x4x256xf32, #tpu.memory_space<vmem>>, vector<1x4x256xf32>
    %25 = vector.shape_cast %24 : vector<1x4x256xf32> to vector<4x256xf32>
    %26 = vector.broadcast %23 : vector<1x256xf32> to vector<4x256xf32>
    %27 = arith.mulf %25, %26 : vector<4x256xf32>
    %cst_9 = arith.constant 0.000000e+00 : f32
    %28 = vector.broadcast %cst_9 : f32 to vector<4x128xf32>
    %c0_10 = arith.constant 0 : index
    %c0_11 = arith.constant 0 : index
    %29 = vector.load %arg7[%c0_10, %c0_11] : memref<4x512xf32, #tpu.memory_space<vmem>>, vector<4x128xf32>
    tpu.vector_store %arg7[%c0_10, %c0_11], %28 {strides = array<i32>} : memref<4x512xf32, #tpu.memory_space<vmem>>, vector<4x128xf32>,
    %cst_12 = arith.constant 0.000000e+00 : f32
    %30 = vector.broadcast %cst_12 : f32 to vector<4x128xf32>
    %c0_13 = arith.constant 0 : index
    %c384 = arith.constant 384 : index
    %31 = vector.load %arg7[%c0_13, %c384] : memref<4x512xf32, #tpu.memory_space<vmem>>, vector<4x128xf32>
    tpu.vector_store %arg7[%c0_13, %c384], %30 {strides = array<i32>} : memref<4x512xf32, #tpu.memory_space<vmem>>, vector<4x128xf32>,
    %c0_14 = arith.constant 0 : index
    %c128 = arith.constant 128 : index
    %32 = vector.load %arg7[%c0_14, %c128] : memref<4x512xf32, #tpu.memory_space<vmem>>, vector<4x256xf32>
    tpu.vector_store %arg7[%c0_14, %c128], %27 {strides = array<i32>} : memref<4x512xf32, #tpu.memory_space<vmem>>, vector<4x256xf32>,
    %cst_15 = arith.constant 0.000000e+00 : f32
    %33 = vector.broadcast %cst_15 : f32 to vector<72x256xf32>
    %c0_16 = arith.constant 0 : index
    %c0_17 = arith.constant 0 : index
    %34 = vector.load %arg8[%c0_16, %c0_17] : memref<72x256xf32, #tpu.memory_space<vmem>>, vector<72x256xf32>
    tpu.vector_store %arg8[%c0_16, %c0_17], %33 {strides = array<i32>} : memref<72x256xf32, #tpu.memory_space<vmem>>, vector<72x256xf32>,
    %c0_18 = arith.constant 0 : index
    %c0_19 = arith.constant 0 : index
    %35 = vector.load %arg3[%c0_18, %c0_19] : memref<4x72xf32, #tpu.memory_space<vmem>>, vector<4x72xf32>
    %c0_20 = arith.constant 0 : index
    %c0_21 = arith.constant 0 : index
    %36 = vector.load %arg4[%c0_20, %c0_21] : memref<4x1xf32, #tpu.memory_space<vmem>>, vector<4x1xf32>
    %c0_22 = arith.constant 0 : index
    %c111 = arith.constant 111 : index
    %37 = vector.load %arg7[%c0_22, %c111] : memref<4x512xf32, #tpu.memory_space<vmem>>, vector<4x256xf32>
    %c0_23 = arith.constant 0 : index
    %c0_24 = arith.constant 0 : index
    %38 = vector.load %arg5[%c0_23, %c0_24] : memref<2x256xf32, #tpu.memory_space<vmem>>, vector<1x256xf32>
    %39 = vector.broadcast %38 : vector<1x256xf32> to vector<4x256xf32>
    %40 = arith.mulf %37, %39 : vector<4x256xf32>
    %c0_25 = arith.constant 0 : index
    %c0_26 = arith.constant 0 : index
    %41 = vector.load %arg8[%c0_25, %c0_26] : memref<72x256xf32, #tpu.memory_space<vmem>>, vector<4x256xf32>
    tpu.vector_store %arg8[%c0_25, %c0_26], %40 {strides = array<i32>} : memref<72x256xf32, #tpu.memory_space<vmem>>, vector<4x256xf32>,
    %c0_27 = arith.constant 0 : index
    %c112 = arith.constant 112 : index
    %42 = vector.load %arg7[%c0_27, %c112] : memref<4x512xf32, #tpu.memory_space<vmem>>, vector<4x256xf32>
    %c8 = arith.constant 8 : index
    %c0_28 = arith.constant 0 : index
    %43 = vector.load %arg8[%c8, %c0_28] : memref<72x256xf32, #tpu.memory_space<vmem>>, vector<4x256xf32>
    tpu.vector_store %arg8[%c8, %c0_28], %42 {strides = array<i32>} : memref<72x256xf32, #tpu.memory_space<vmem>>, vector<4x256xf32>,
    %c0_29 = arith.constant 0 : index
    %c113 = arith.constant 113 : index
    %44 = vector.load %arg7[%c0_29, %c113] : memref<4x512xf32, #tpu.memory_space<vmem>>, vector<4x256xf32>
    %c1 = arith.constant 1 : index
    %c0_30 = arith.constant 0 : index
    %45 = vector.load %arg5[%c1, %c0_30] : memref<2x256xf32, #tpu.memory_space<vmem>>, vector<1x256xf32>
    %46 = vector.broadcast %45 : vector<1x256xf32> to vector<4x256xf32>
    %47 = arith.mulf %44, %46 : vector<4x256xf32>
    %c16 = arith.constant 16 : index
    %c0_31 = arith.constant 0 : index
    %48 = vector.load %arg8[%c16, %c0_31] : memref<72x256xf32, #tpu.memory_space<vmem>>, vector<4x256xf32>
    tpu.vector_store %arg8[%c16, %c0_31], %47 {strides = array<i32>} : memref<72x256xf32, #tpu.memory_space<vmem>>, vector<4x256xf32>,
    %c0_32 = arith.constant 0 : index
    %c127 = arith.constant 127 : index
    %49 = vector.load %arg7[%c0_32, %c127] : memref<4x512xf32, #tpu.memory_space<vmem>>, vector<4x256xf32>
    %c0_33 = arith.constant 0 : index
    %c0_34 = arith.constant 0 : index
    %50 = vector.load %arg5[%c0_33, %c0_34] : memref<2x256xf32, #tpu.memory_space<vmem>>, vector<1x256xf32>
    %51 = vector.broadcast %50 : vector<1x256xf32> to vector<4x256xf32>
    %52 = arith.mulf %49, %51 : vector<4x256xf32>
    %c24 = arith.constant 24 : index
    %c0_35 = arith.constant 0 : index
    %53 = vector.load %arg8[%c24, %c0_35] : memref<72x256xf32, #tpu.memory_space<vmem>>, vector<4x256xf32>
    tpu.vector_store %arg8[%c24, %c0_35], %52 {strides = array<i32>} : memref<72x256xf32, #tpu.memory_space<vmem>>, vector<4x256xf32>,
    %c0_36 = arith.constant 0 : index
    %c128_37 = arith.constant 128 : index
    %54 = vector.load %arg7[%c0_36, %c128_37] : memref<4x512xf32, #tpu.memory_space<vmem>>, vector<4x256xf32>
    %c32 = arith.constant 32 : index
    %c0_38 = arith.constant 0 : index
    %55 = vector.load %arg8[%c32, %c0_38] : memref<72x256xf32, #tpu.memory_space<vmem>>, vector<4x256xf32>
    tpu.vector_store %arg8[%c32, %c0_38], %54 {strides = array<i32>} : memref<72x256xf32, #tpu.memory_space<vmem>>, vector<4x256xf32>,
    %c0_39 = arith.constant 0 : index
    %c129 = arith.constant 129 : index
    %56 = vector.load %arg7[%c0_39, %c129] : memref<4x512xf32, #tpu.memory_space<vmem>>, vector<4x256xf32>
    %c1_40 = arith.constant 1 : index
    %c0_41 = arith.constant 0 : index
    %57 = vector.load %arg5[%c1_40, %c0_41] : memref<2x256xf32, #tpu.memory_space<vmem>>, vector<1x256xf32>
    %58 = vector.broadcast %57 : vector<1x256xf32> to vector<4x256xf32>
    %59 = arith.mulf %56, %58 : vector<4x256xf32>
    %c40 = arith.constant 40 : index
    %c0_42 = arith.constant 0 : index
    %60 = vector.load %arg8[%c40, %c0_42] : memref<72x256xf32, #tpu.memory_space<vmem>>, vector<4x256xf32>
    tpu.vector_store %arg8[%c40, %c0_42], %59 {strides = array<i32>} : memref<72x256xf32, #tpu.memory_space<vmem>>, vector<4x256xf32>,
    %c0_43 = arith.constant 0 : index
    %c143 = arith.constant 143 : index
    %61 = vector.load %arg7[%c0_43, %c143] : memref<4x512xf32, #tpu.memory_space<vmem>>, vector<4x256xf32>
    %c0_44 = arith.constant 0 : index
    %c0_45 = arith.constant 0 : index
    %62 = vector.load %arg5[%c0_44, %c0_45] : memref<2x256xf32, #tpu.memory_space<vmem>>, vector<1x256xf32>
    %63 = vector.broadcast %62 : vector<1x256xf32> to vector<4x256xf32>
    %64 = arith.mulf %61, %63 : vector<4x256xf32>
    %c48 = arith.constant 48 : index
    %c0_46 = arith.constant 0 : index
    %65 = vector.load %arg8[%c48, %c0_46] : memref<72x256xf32, #tpu.memory_space<vmem>>, vector<4x256xf32>
    tpu.vector_store %arg8[%c48, %c0_46], %64 {strides = array<i32>} : memref<72x256xf32, #tpu.memory_space<vmem>>, vector<4x256xf32>,
    %c0_47 = arith.constant 0 : index
    %c144 = arith.constant 144 : index
    %66 = vector.load %arg7[%c0_47, %c144] : memref<4x512xf32, #tpu.memory_space<vmem>>, vector<4x256xf32>
    %c56 = arith.constant 56 : index
    %c0_48 = arith.constant 0 : index
    %67 = vector.load %arg8[%c56, %c0_48] : memref<72x256xf32, #tpu.memory_space<vmem>>, vector<4x256xf32>
    tpu.vector_store %arg8[%c56, %c0_48], %66 {strides = array<i32>} : memref<72x256xf32, #tpu.memory_space<vmem>>, vector<4x256xf32>,
    %c0_49 = arith.constant 0 : index
    %c145 = arith.constant 145 : index
    %68 = vector.load %arg7[%c0_49, %c145] : memref<4x512xf32, #tpu.memory_space<vmem>>, vector<4x256xf32>
    %c1_50 = arith.constant 1 : index
    %c0_51 = arith.constant 0 : index
    %69 = vector.load %arg5[%c1_50, %c0_51] : memref<2x256xf32, #tpu.memory_space<vmem>>, vector<1x256xf32>
    %70 = vector.broadcast %69 : vector<1x256xf32> to vector<4x256xf32>
    %71 = arith.mulf %68, %70 : vector<4x256xf32>
    %c64 = arith.constant 64 : index
    %c0_52 = arith.constant 0 : index
    %72 = vector.load %arg8[%c64, %c0_52] : memref<72x256xf32, #tpu.memory_space<vmem>>, vector<4x256xf32>
    tpu.vector_store %arg8[%c64, %c0_52], %71 {strides = array<i32>} : memref<72x256xf32, #tpu.memory_space<vmem>>, vector<4x256xf32>,
    %c0_53 = arith.constant 0 : index
    %c0_54 = arith.constant 0 : index
    %73 = vector.load %arg8[%c0_53, %c0_54] : memref<72x256xf32, #tpu.memory_space<vmem>>, vector<72x256xf32>
    %cst_55 = arith.constant dense<0.000000e+00> : vector<4x256xf32>
    %74 = tpu.matmul %35, %73, %cst_55 {dimension_numbers = #tpu.dot_dimension_numbers<[1], [0], [0], [1], [0, 0, 1, 1], [], []>} : vector<4x72xf32>, vector<72x256xf32>, vector<4x256xf32> -> vector<4x256xf32>
    %75 = vector.broadcast %36 : vector<4x1xf32> to vector<4x256xf32>
    %76 = arith.addf %74, %75 : vector<4x256xf32>
    %c0_56 = arith.constant 0 : index
    %c0_57 = arith.constant 0 : index
    %c0_58 = arith.constant 0 : index
    %77 = vector.load %arg6[%c0_56, %c0_57, %c0_58] : memref<1x4x256xf32, #tpu.memory_space<vmem>>, vector<1x4x256xf32>
    %78 = vector.shape_cast %77 : vector<1x4x256xf32> to vector<4x256xf32>
    %79 = vector.shape_cast %76 : vector<4x256xf32> to vector<1x4x256xf32>
    tpu.vector_store %arg6[%c0_56, %c0_57, %c0_58], %79 {strides = array<i32>} : memref<1x4x256xf32, #tpu.memory_space<vmem>>, vector<1x4x256xf32>,
    return
  }
  func.func @transform_0(%arg0: i32) -> (i32, i32, i32) {
    %c0_i32 = arith.constant 0 : i32
    %c0_i32_0 = arith.constant 0 : i32
    %c0_i32_1 = arith.constant 0 : i32
    return %arg0, %c0_i32, %c0_i32_0 : i32, i32, i32
  }
  func.func @transform_1(%arg0: i32) -> (i32, i32, i32) {
    %c0_i32 = arith.constant 0 : i32
    %c0_i32_0 = arith.constant 0 : i32
    %c0_i32_1 = arith.constant 0 : i32
    return %arg0, %c0_i32, %c0_i32_0 : i32, i32, i32
  }
  func.func @transform_2(%arg0: i32) -> (i32, i32) {
    %c0_i32 = arith.constant 0 : i32
    %c0_i32_0 = arith.constant 0 : i32
    %c0_i32_1 = arith.constant 0 : i32
    return %c0_i32, %c0_i32_0 : i32, i32
  }
  func.func @transform_3(%arg0: i32) -> (i32, i32) {
    %c0_i32 = arith.constant 0 : i32
    %c0_i32_0 = arith.constant 0 : i32
    %c0_i32_1 = arith.constant 0 : i32
    return %c0_i32, %c0_i32_0 : i32, i32
  }
  func.func @transform_4(%arg0: i32) -> (i32, i32) {
    %c0_i32 = arith.constant 0 : i32
    %c0_i32_0 = arith.constant 0 : i32
    %c0_i32_1 = arith.constant 0 : i32
    return %c0_i32, %c0_i32_0 : i32, i32
  }
  func.func @transform_5(%arg0: i32) -> (i32, i32, i32) {
    %c0_i32 = arith.constant 0 : i32
    %c0_i32_0 = arith.constant 0 : i32
    %c0_i32_1 = arith.constant 0 : i32
    return %arg0, %c0_i32, %c0_i32_0 : i32, i32, i32
  }
}

</mosaic_0001>

<bundles_post_ra>
// kernel: tpu_custom_call.1
= control target key start
LH: loop header
LB: loop body
LE: loop exit
PB: predicated region body
PF: predicated region fallthrough
CT: control target
= control target key end

     0   :  { %10 = vsyncpa [#allocation5], 0  ;;  %s1646_s0 = inlined_call_operand.vmem [shape: f32[2,1,256], index: 0, kind: input, shape index: {}]   ;;  %s1647_s1 = inlined_call_operand.hbm [shape: f32[2,4,256], index: 1, kind: input, shape index: {}]   ;;  %s1648_s2 = inlined_call_operand.vmem [shape: f32[4,72], index: 2, kind: input, shape index: {}]   ;;  %s1649_s3 = inlined_call_operand.vmem [shape: f32[4,1], index: 3, kind: input, shape index: {}]   ;;  %s1650_s4 = inlined_call_operand.vmem [shape: f32[2,256], index: 4, kind: input, shape index: {}]   ;;  %s1651_s5 = inlined_call_operand.hbm [shape: f32[2,4,256], index: 5, kind: output, shape index: {}]  }
   0x1   :  { %12 = vsyncpa [#allocation5 + $0x1], 0 }
   0x2   :  { %13 = vsyncpa [#allocation6], 0 }
   0x3   :  { %15 = vsyncpa [#allocation6 + $0x1], 0  ;;  %s1284_s18 = smov 0   ;;  %s1286_s19 = smov 0  }
   0x4   :  { %s1288_s20 = smov 0   ;;  %s1290_s21 = smov 0  }
   0x5 LB: > { %s1305_s22 = sadd.s32 4294967295, %s1237_s21   ;;  %s1039_s23 = sadd.s32 4294967294, %s1237_s21   ;;  %s1237_s21 = sphi %s1290_s21, %s1666_s21   ;;  %s1233_s20 = sphi %s1288_s20, %s1665_s20   ;;  %s1229_s19 = sphi %s1286_s19, %s1664_s19   ;;  %s1225_s18 = sphi %s1284_s18, %s1663_s18  }
   0x6   : > { %s1309_s24 = sadd.s32 1, %s1237_s21   ;;  %s54_s25 = sadd.s32 1, %s1233_s20 }
   0x7   : > { %s51_s26 = ssub.s32 %s1237_s21, %s1309_s24  ;;  %p61_p0 = scmp.ne.s32.totalorder %s1233_s20, %s1229_s19 }
   0x8   : > { %p52_p1 = scmp.eq.s32.totalorder %s51_s26, 0  ;;  %p62_p2 = scmp.eq.s32.totalorder %s1237_s21, 0 }
   0x9   : > { %p67_p3 = scmp.ne.s32.totalorder %s1229_s19, %s1225_s18  ;;  %p68_p4 = scmp.eq.s32.totalorder %s1305_s22, 0 }
   0xa   : > { %s1321_s27 = scalar_select %p52_p1, %s1233_s20, %s54_s25  }
   0xb   : > { %p1323_p5 = por %p62_p2, %p61_p0  ;;  %p1327_p6 = por %p68_p4, %p67_p3 }
   0xc   : > { %p154_p7 = scmp.eq.s32.totalorder %s1305_s22, 1  ;;  %p160_p8 = scmp.eq.s32.totalorder %s1039_s23, 1 }
   0xd   : > { %p1088_p10 = scmp.lt.s32.totalorder %s1237_s21, 2  ;;  %s196_s7 = sand.u32 1, %s1233_s20  }
   0xe   : > { %p1334_p11 = por %p154_p7, %p61_p0  ;;  %p1338_p12 = por %p160_p8, %p67_p3 }
   0xf   : > { %s1058_s8 = sshll.u32 %s1237_s21, 7  ;;  %s1042_s9 = sshll.u32 %s196_s7, 3 }
  0x10   : > { %s1655_s30 = scalar_select %p1334_p11, 1, 0 }
  0x11   : > { %s1656_s6 = scalar_select %p1338_p12, 1, 0 }
  0x12   : > { %s1347_s12 = scalar_lea.hbm %s1647_s1, %s1058_s8  ;;  %s200_s13 = scalar_lea.vmem [#allocation4], %s1042_s9 }
  0x13   : > { %s208_s14 = sshll.u32 %s200_s13, 4  ;;  %p1351_p13 = pnand %p1088_p10, %p1323_p5  ;;  %s1355_s14 = int_to_ptr.vmem [resolvable:$true] %s208_s14 }
  0x14   : > { %s197_s16 = scalar_lea.sflag [#allocation5], %s196_s7  ;;  %s1141_s17 = scalar_lea.hbm %s1347_s12, 128 }
  0x15   : > { %p1142_p2 = scmp.ne.s32.totalorder %s1347_s12, %s1141_s17  ;;  %p1143_p3 = pneg %p1351_p13 }
  0x16   : > { %s1146_s26 = scalar_lea.hbm %s1647_s1, 256  ;;  %p1147_p5 = scmp.lt.u32.totalorder %s1347_s12, %s1647_s1 }
  0x17   : > { %p1144_p4 = pnand %p1143_p3, %p1142_p2  ;;  %p1148_p8 = scmp.lt.u32.totalorder %s1146_s26, %s1141_s17 }
  0x18   : > { %p1150_p9 = scmp.lt.u32.totalorder %s1141_s17, %s1347_s12 }
  0x19   : > { %p1145_p7 = pneg %p1144_p4  ;;  %p1149_p10 = por %p1148_p8, %p1147_p5 }
  0x1b   : > { %p1151_p0 = por %p1150_p9, %p1149_p10 }
  0x1d   : > { %p1152_p1 = pnand %p1151_p0, %p1145_p7 }
  0x1f   : > { %1155 = shalt.err (!%p1152_p1)
}
  0x20   : > { %s1156_s7 = scalar_lea.vmem %s1355_s14, 128  ;;  %s1239_s9 = smov [#allocation4]  }
  0x21   : > { %p1157_p2 = scmp.ne.s32.totalorder %s1355_s14, %s1156_s7  ;;  %s1161_s10 = sshll.u32 %s1239_s9, 4  ;;  %s1162_s10 = int_to_ptr.vmem [resolvable:$false] %s1161_s10 }
  0x22   : > { %s1163_s11 = scalar_lea.vmem %s1162_s10, 256  ;;  %p1164_p11 = scmp.lt.s32.totalorder %s1355_s14, %s1162_s10 }
  0x23   : > { %p1159_p4 = pnand %p1157_p2, %p1143_p3  ;;  %p1165_p5 = scmp.lt.s32.totalorder %s1163_s11, %s1156_s7 }
  0x25   : > { %p1160_p12 = pneg %p1159_p4  ;;  %p1166_p8 = por %p1165_p5, %p1164_p11 }
  0x27   : > { %p1167_p9 = pnand %p1166_p8, %p1160_p12 }
  0x29   : > { %1170 = shalt.err (!%p1167_p9)
}
  0x2a   : > { %1083 = dma.hbm_to_vmem [thread:$0]  (!%p1351_p13), %s1347_s12, 128, %s1355_s14, %s197_s16  }
  0x2b   : > { %p1658_p0 = scmp.lt.s32.totalorder %s1237_s21, 3  ;;  %p1659_p1 = scmp.ge.s32.totalorder %s1237_s21, 1 }
  0x2d   : > { %p214_p3 = pnand %p1659_p1, %p1658_p0 }
  0x2e   : > { %s1389_s13 = sand.u32 (!%p214_p3), 1, %s1229_s19  }
  0x2f   : > { %217 = sbr.rel (%p214_p3) target bundleno = 1290 (0x50a), region = 40  ;;  %s1046_s17 = sshll.u32 (!%p214_p3), %s1389_s13, 3 }
  0x30   : > { %s220_s23 = scalar_lea.sflag (!%p214_p3), [#allocation5], %s1389_s13  ;;  %s1395_s15 = scalar_lea.vmem (!%p214_p3), [#allocation4], %s1046_s17 }
  0x36   : > { %1216 = dma.done.wait (%p1327_p6), %s220_s23, 128  }
  0x37   : > { %1218 = vsyncadd (%p1327_p6), %s220_s23, 4294967168  ;;  %p254_p11 = scmp.lt.s32.totalorder %s1305_s22, 1  ;;  %v260_v0 = vlaneseq  ;;  %s1240_s29 = smov 16   ;;  %v1241_v7 = vmov 1966171168   ;;  %vm590_vm3 = vcmask 908288  }
  0x38   : > { %v283_v8 = vunpack.c.l.s4 %v1241_v7  ;;  %s1242_s28 = smov 32   ;;  %s1243_s8 = smov 64   ;;  %vm647_vm4 = vcmask 924672   ;;  %vm700_vm5 = vcmask 7168   ;;  %vm685_vm6 = vcmask 1039360  }
  0x39   : > { %s255_s12 = scalar_select %p254_p11, %s1305_s22, 1  ;;  %v261_v1 = vshrl.u32 %v260_v0, 7  ;;  %v1414_v9 = vand.u32 127, %v260_v0  ;;  %vm662_vm7 = vcmask 121856   ;;  %vm605_vm8 = vcmask 138240  }
  0x3a   : > { %v284_v10 = vunpack.c.0.s8 %v283_v8  ;;  %s1244_s9 = smov 111   ;;  %s1246_s10 = smov 127   ;;  %vm623_vm9 = vcmask 130048   ;;  %vm796_vm10 = vcmask 916480   ;;  %vm862_vm11 = vcmask 588800  }
  0x3b   : > { %s1048_s14 = sshll.u32 %s255_s12, 1  ;;  %v1403_v2 = vsub.s32 0, %v261_v1  ;;  %v1408_v3 = vsub.s32 1, %v261_v1  ;;  %vm276_vm0 = vcmp.lt.s32.totalorder %v1414_v9, 16  ;;  %vm313_vm1 = vcmp.lt.s32.totalorder %v1414_v9, 32  ;;  %s1247_s11 = smov 1  }
  0x3c   : > { %s257_s26 = scalar_lea.vmem %s1646_s0, %s1048_s14  ;;  %v1417_v12 = vsub.s32 %v284_v10, %v261_v1  ;;  %vm350_vm2 = vcmp.lt.s32.totalorder %v1414_v9, 64  ;;  %s1248_s23 = smov 15  }
  0x3d   : > { %v258_v4 = vld [vmem:[%s257_s26] sm:$0x3]  ;;  %s1249_s12 = smov 17   ;;  %s1059_s26 = sshll.u32 %s1305_s22, 7 }
  0x3e   : > { %v263_v5 = vrot.slane %v258_v4, %v1403_v2  ;;  %v267_v6 = vrot.slane %v258_v4, %v1408_v3  ;;  %p1660_p12 = scmp.ne.s32.totalorder %s1655_s30, 0  ;;  %s1253_s22 = smov [#allocation7]  }
  0x40   : > { %270 = vrot.lane.b32.xlu0 %v263_v5, %s1240_s29  ;;  %v576_v5 = vld [vmem:[%s1650_s4] ss:$2 sm:$0x3] }
  0x41   : > { %v581_v8 = vrot.slane %v576_v5, %v1403_v2  ;;  %v585_v10 = vrot.slane %v576_v5, %v1408_v3 }
  0x44   : > { %272 = vrot.lane.b32.xlu0 %v267_v6, %s1240_s29  ;;  %v1049_v6 = vld [vmem:[%s1650_s4 + $0x1] ss:$2 sm:$0x3] }
  0xb2   : > { %v271_v11 = vpop.permute.xlu0 %270 }
  0xb6   : > { %v273_v13 = vpop.permute.xlu0 %272 }
  0xb7   : > { %v277_v14 = vsel %vm276_vm0, %v271_v11, %v273_v13  ;;  %v278_v15 = vsel %vm276_vm0, %v273_v13, %v271_v11  ;;  %v638_v13 = vrot.slane %v1049_v6, %v1403_v2 }
  0xb8   : > { %v281_v16 = vcombine.low %v278_v15, %v277_v14  ;;  %v642_v14 = vrot.slane %v1049_v6, %v1408_v3  ;;  %v671_v15 = vld [vmem:[%s1650_s4] ss:$2 sm:$0x3] }
  0xba   : > { %v288_v17 = vrot.slane %v281_v16, %v1417_v12  ;;  %v1050_v16 = vld [vmem:[%s1650_s4 + $0x1] ss:$2 sm:$0x3] }
  0xbc   : > { %v295_v18 = vrot.slane %v288_v17, %v1417_v12 }
  0xbe   : > { %v297_v19 = vmax.f32 %v258_v4, %v295_v18 }
  0xc0   : > { %v302_v20 = vrot.slane %v297_v19, %v1403_v2  ;;  %v306_v21 = vrot.slane %v297_v19, %v1408_v3 }
  0xc2   : > { %309 = vrot.lane.b32.xlu1 %v302_v20, %s1242_s28  ;;  %v676_v20 = vrot.slane %v671_v15, %v1403_v2 }
  0xc6   : > { %311 = vrot.lane.b32.xlu1 %v306_v21, %s1242_s28  ;;  %v680_v21 = vrot.slane %v671_v15, %v1408_v3 }
 0x134   : > { %v310_v22 = vpop.permute.xlu1 %309 }
 0x138   : > { %v312_v23 = vpop.permute.xlu1 %311 }
 0x139   : > { %v314_v24 = vsel %vm313_vm1, %v310_v22, %v312_v23  ;;  %v315_v25 = vsel %vm313_vm1, %v312_v23, %v310_v22  ;;  %v643_v22 = vcombine.low %v638_v13, %v642_v14  ;;  %v720_v23 = vrot.slane %v1050_v16, %v1403_v2 }
 0x13a   : > { %v318_v26 = vcombine.low %v315_v25, %v314_v24  ;;  %v724_v24 = vrot.slane %v1050_v16, %v1408_v3  ;;  %v751_v25 = vld [vmem:[%s1650_s4] ss:$2 sm:$0x3] }
 0x13c   : > { %v325_v27 = vrot.slane %v318_v26, %v1417_v12  ;;  %v1051_v26 = vld [vmem:[%s1650_s4 + $0x1] ss:$2 sm:$0x3] }
 0x13e   : > { %v332_v28 = vrot.slane %v325_v27, %v1417_v12  ;;  %v681_v27 = vcombine.low %v676_v20, %v680_v21 }
 0x140   : > { %v334_v29 = vmax.f32 %v297_v19, %v332_v28  ;;  %v586_v19 = vcombine.low %v581_v8, %v585_v10  ;;  %v756_v28 = vrot.slane %v751_v25, %v1403_v2 }
 0x142   : > { %v343_v30 = vrot.slane %v334_v29, %v1408_v3  ;;  %v339_v31 = vrot.slane %v334_v29, %v1403_v2 }
 0x144   : > { %348 = vrot.lane.b32.xlu1 %v343_v30, %s1243_s8  ;;  %346 = vrot.lane.b32.xlu0 %v339_v31, %s1243_s8  ;;  %v725_v30 = vcombine.low %v720_v23, %v724_v24  ;;  %v810_v31 = vrot.slane %v1051_v26, %v1403_v2 }
 0x1b6   : > { %v349_v32 = vpop.permute.xlu1 %348  ;;  %v347_v33 = vpop.permute.xlu0 %346 }
 0x1b7   : > { %v351_v34 = vsel %vm350_vm2, %v347_v33, %v349_v32  ;;  %v352_v35 = vsel %vm350_vm2, %v349_v32, %v347_v33  ;;  %v814_v32 = vrot.slane %v1051_v26, %v1408_v3 }
 0x1b8   : > { %v355_v36 = vcombine.low %v352_v35, %v351_v34  ;;  %v1250_v35 = vmov 0.0  }
 0x1b9   : > { %v815_v34 = vcombine.low %v810_v31, %v814_v32  ;;  %551 = vst [vmem:[#allocation2] sm:$0xf] %v1250_v35  ;;  %552 = vst [vmem:[#allocation2 + $0xc] sm:$0xf] %v1250_v35  ;;  %930 = vmatprep.mubr.f32.mxu0 %v1250_v35 }
 0x1ba   : > { %v362_v37 = vrot.slane %v355_v36, %v1417_v12  ;;  %554 = vst [vmem:[#allocation3] sm:$0xff] %v1250_v35  ;;  %555 = vst [vmem:[#allocation3 + $0x8] sm:$0xff] %v1250_v35 }
 0x1bb   : > { %556 = vst [vmem:[#allocation3 + $0x10] sm:$0xff] %v1250_v35  ;;  %557 = vst [vmem:[#allocation3 + $0x18] sm:$0xff] %v1250_v35 }
 0x1bc   : > { %v369_v38 = vrot.slane %v362_v37, %v1417_v12  ;;  %558 = vst [vmem:[#allocation3 + $0x20] sm:$0xff] %v1250_v35  ;;  %559 = vst [vmem:[#allocation3 + $0x28] sm:$0xff] %v1250_v35 }
 0x1bd   : > { %560 = vst [vmem:[#allocation3 + $0x30] sm:$0xff] %v1250_v35  ;;  %561 = vst [vmem:[#allocation3 + $0x38] sm:$0xff] %v1250_v35 }
 0x1be   : > { %v371_v39 = vmax.f32 %v334_v29, %v369_v38  ;;  %v760_v29 = vrot.slane %v751_v25, %v1408_v3  ;;  %562 = vst [vmem:[#allocation3 + $0x40] sm:$0xff] %v1250_v35  ;;  %563 = vst [vmem:[#allocation3 + $0x48] sm:$0xff] %v1250_v35 }
 0x1bf   : > { %564 = vst [vmem:[#allocation3 + $0x50] sm:$0xff] %v1250_v35  ;;  %565 = vst [vmem:[#allocation3 + $0x58] sm:$0xff] %v1250_v35 }
 0x1c0   : > { %v376_v40 = vrot.slane %v371_v39, %v1403_v2  ;;  %v380_v41 = vrot.slane %v371_v39, %v1408_v3  ;;  %v761_v33 = vcombine.low %v756_v28, %v760_v29  ;;  %566 = vst [vmem:[#allocation3 + $0x60] sm:$0xff] %v1250_v35  ;;  %567 = vst [vmem:[#allocation3 + $0x68] sm:$0xff] %v1250_v35 }
 0x1c1   : > { %568 = vst [vmem:[#allocation3 + $0x70] sm:$0xff] %v1250_v35  ;;  %569 = vst [vmem:[#allocation3 + $0x78] sm:$0xff] %v1250_v35 }
 0x1c2   : > { %v381_v42 = vcombine.low %v380_v41, %v376_v40  ;;  %570 = vst [vmem:[#allocation3 + $0x80] sm:$0xff] %v1250_v35  ;;  %571 = vst [vmem:[#allocation3 + $0x88] sm:$0xff] %v1250_v35 }
 0x1c4   : > { %v388_v43 = vrot.slane %v381_v42, %v1417_v12 }
 0x1c6   : > { %v395_v44 = vrot.slane %v388_v43, %v1417_v12 }
 0x1c8   : > { %v397_v45 = vmax.f32 %v371_v39, %v395_v44 }
 0x1ca   : > { %v398_v46 = vsub.f32 %v258_v4, %v397_v45 }
 0x1cc   : > { %v399_v47 = vmul.f32 1.442695, %v398_v46 }
 0x1ce   : > { %1137 = vpow2.f32 %v399_v47  ;;  %v714_v47 = vld [vmem:[#allocation2 + $0xc] sm:$0xf] }
 0x1d8   : > { %v1451_v48 = vpop.eup %1137 }
 0x1d9   : > { %v409_v49 = vrot.slane %v1451_v48, %v1408_v3  ;;  %v405_v50 = vrot.slane %v1451_v48, %v1403_v2 }
 0x1db   : > { %414 = vrot.lane.b32.xlu1 %v409_v49, %s1240_s29  ;;  %412 = vrot.lane.b32.xlu0 %v405_v50, %s1240_s29 }
 0x24d   : > { %v415_v51 = vpop.permute.xlu1 %414  ;;  %v413_v52 = vpop.permute.xlu0 %412 }
 0x24e   : > { %v416_v53 = vsel %vm276_vm0, %v413_v52, %v415_v51  ;;  %v417_v54 = vsel %vm276_vm0, %v415_v51, %v413_v52 }
 0x24f   : > { %v420_v55 = vcombine.low %v417_v54, %v416_v53  ;;  %v750_v54 = vld [vmem:[#allocation2 + $0xc] sm:$0xf] }
 0x251   : > { %v427_v56 = vrot.slane %v420_v55, %v1417_v12 }
 0x253   : > { %v434_v57 = vrot.slane %v427_v56, %v1417_v12 }
 0x255   : > { %v436_v58 = vadd.f32 %v1451_v48, %v434_v57 }
 0x257   : > { %v445_v59 = vrot.slane %v436_v58, %v1408_v3  ;;  %v441_v60 = vrot.slane %v436_v58, %v1403_v2 }
 0x259   : > { %450 = vrot.lane.b32.xlu1 %v445_v59, %s1242_s28  ;;  %448 = vrot.lane.b32.xlu0 %v441_v60, %s1242_s28  ;;  %s253_s28 = scalar_lea.vmem [#allocation7], %s1046_s17  ;;  %s1175_s17 = sshll.u32 %s1253_s22, 4  ;;  %s1176_s17 = int_to_ptr.vmem [resolvable:$false] %s1175_s17 }
 0x25a   : > { %s957_s7 = sshll.u32 %s253_s28, 4  ;;  %s1604_s7 = int_to_ptr.vmem [resolvable:$true] %s957_s7 }
 0x25b   : > { %p1178_p10 = scmp.lt.s32.totalorder %s1604_s7, %s1176_s17 }
 0x2cb   : > { %v451_v61 = vpop.permute.xlu1 %450  ;;  %v449_v62 = vpop.permute.xlu0 %448 }
 0x2cc   : > { %v452_v63 = vsel %vm313_vm1, %v449_v62, %v451_v61  ;;  %v453_v0 = vsel %vm313_vm1, %v451_v61, %v449_v62 }
 0x2cd   : > { %v456_v1 = vcombine.low %v453_v0, %v452_v63 }
 0x2cf   : > { %v463_v4 = vrot.slane %v456_v1, %v1417_v12 }
 0x2d1   : > { %v470_v7 = vrot.slane %v463_v4, %v1417_v12  ;;  %v538_v4 = vld [vmem:[%s1395_s15] sm:$0xff]  ;;  %s1251_s15 = smov 112  }
 0x2d3   : > { %v1484_v11 = vadd.f32 %v470_v7, %v436_v58 }
 0x2d5   : > { %v481_v17 = vrot.slane %v1484_v11, %v1408_v3  ;;  %v477_v18 = vrot.slane %v1484_v11, %v1403_v2 }
 0x2d7   : > { %486 = vrot.lane.b32.xlu1 %v481_v17, %s1243_s8  ;;  %484 = vrot.lane.b32.xlu0 %v477_v18, %s1243_s8  ;;  %s1245_s8 = smov 113  }
 0x2db   : > { %587 = vrot.lane.b32.xlu0 %v586_v19, %s1244_s9  ;;  %644 = vrot.lane.b32.xlu1 %v643_v22, %s1245_s8 }
 0x2df   : > { %682 = vrot.lane.b32.xlu0 %v681_v27, %s1246_s10  ;;  %726 = vrot.lane.b32.xlu1 %v725_v30, %s1247_s11 }
 0x2e3   : > { %762 = vrot.lane.b32.xlu0 %v761_v33, %s1248_s23  ;;  %816 = vrot.lane.b32.xlu1 %v815_v34, %s1249_s12 }
 0x349   : > { %v487_v36 = vpop.permute.xlu1 %486  ;;  %v485_v37 = vpop.permute.xlu0 %484 }
 0x34a   : > { %v488_v38 = vsel %vm350_vm2, %v485_v37, %v487_v36  ;;  %v489_v39 = vsel %vm350_vm2, %v487_v36, %v485_v37  ;;  %v786_v37 = vld [vmem:[#allocation2 + $0xc] sm:$0xf] }
 0x34b   : > { %v492_v40 = vcombine.low %v489_v39, %v488_v38  ;;  %v804_v39 = vld [vmem:[#allocation2 + $0xc] sm:$0xf] }
 0x34d   : > { %v499_v41 = vrot.slane %v492_v40, %v1417_v12  ;;  %v588_v42 = vpop.permute.xlu0 %587  ;;  %v645_v43 = vpop.permute.xlu1 %644 }
 0x34e   : > { %v589_v8 = vrot.slane %v588_v42, 4 }
 0x34f   : > { %v506_v44 = vrot.slane %v499_v41, %v1417_v12  ;;  %v1252_v41 = vmov 0  }
 0x350   : > { %v591_v10 = vsel %vm590_vm3, %v589_v8, %v588_v42  ;;  %1135 = vset.pattern.permute.xlu0 %v1252_v41  ;;  %v573_v42 = vld [vmem:[%s1649_s3] sm:$0xf] }
 0x351   : > { %v508_v45 = vadd.f32 %v506_v44, %v1484_v11  ;;  %v1527_v46 = vpop.permute.xlu0 %682  ;;  %v727_v49 = vpop.permute.xlu1 %726  ;;  %v646_v11 = vrot.slane %v645_v43, 4 }
 0x352   : > { %v728_v50 = vrot.slane %v727_v49, 4  ;;  %v684_v21 = vrot.slane %v1527_v46, 4 }
 0x353   : > { %v513_v51 = vrot.slane %v508_v45, %v1403_v2  ;;  %v517_v52 = vrot.slane %v508_v45, %v1408_v3  ;;  %v648_v16 = vsel %vm647_vm4, %v646_v11, %v645_v43 }
 0x354   : > { %v733_v9 = vmul.f32 %v728_v50, %v714_v47  ;;  %v729_v18 = vsel %vm700_vm5, %v728_v50, %v727_v49  ;;  %v686_v25 = vsel %vm685_vm6, %v684_v21, %v1527_v46 }
 0x355   : > { %v518_v53 = vcombine.low %v517_v52, %v513_v51  ;;  %v763_v55 = vpop.permute.xlu0 %762  ;;  %v817_v27 = vpop.permute.xlu1 %816 }
 0x356   : > { %v764_v56 = vrot.slane %v763_v55, 4  ;;  %741 = vrot.lane.b32.xlu1 %v733_v9, %s1246_s10  ;;  %v818_v30 = vrot.slane %v817_v27, 4 }
 0x357   : > { %v525_v57 = vrot.slane %v518_v53, %v1417_v12 }
 0x358   : > { %v769_v58 = vmul.f32 %v764_v56, %v750_v54  ;;  %v765_v29 = vsel %vm662_vm7, %v764_v56, %v763_v55  ;;  %v819_v33 = vsel %vm605_vm8, %v818_v30, %v817_v27  ;;  %v823_v40 = vmul.f32 %v818_v30, %v804_v39 }
 0x359   : > { %v532_v59 = vrot.slane %v525_v57, %v1417_v12 }
 0x35a   : > { %777 = vrot.lane.b32.xlu0 %v769_v58, %s1245_s8 }
 0x35b   : > { %v534_v60 = vadd.f32 %v532_v59, %v508_v45 }
 0x35d   : > { %1139 = vrcp.f32 %v534_v60 }
 0x367   : > { %v1140_v61 = vpop.eup %1139 }
 0x368   : > { %v536_v62 = vmul.f32 %v1140_v61, %v1451_v48 }
 0x36a   : > { %v537_v63 = vadd.f32 1.0, %v536_v62 }
 0x36c   : > { %v543_v0 = vrot.slane %v537_v63, %v1403_v2  ;;  %v547_v1 = vrot.slane %v537_v63, %v1408_v3 }
 0x36e   : > { %v548_v5 = vcombine.low %v543_v0, %v547_v1 }
 0x370   : > { %v1539_v6 = vmul.f32 %v548_v5, %v538_v4 }
 0x372   : > { %553 = vst [vmem:[#allocation2 + $0x4] sm:$0xff] %v1539_v6  ;;  %v789_v12 = vcombine.high %v1539_v6, %v1539_v6  ;;  %711 = vst [vmem:[#allocation3 + $0x40] sm:$0xf] %v1539_v6  ;;  %v732_v22 = vmul.f32 %v729_v18, %v1539_v6  ;;  %v768_v32 = vmul.f32 %v765_v29, %v1539_v6 }
 0x373   : > { %v822_v35 = vmul.f32 %v819_v33, %v1539_v6 }
 0x374   : > { %712 = vst [vmem:[#allocation3 + $0x48] sm:$0xf] %v789_v12  ;;  %v736_v34 = vcombine.high %v732_v22, %v732_v22  ;;  %v772_v36 = vcombine.high %v768_v32, %v768_v32 }
 0x375   : > { %v826_v38 = vcombine.high %v822_v35, %v822_v35 }
 0x379   : > { %v574_v7 = vld [vmem:[#allocation2] sm:$0xff]  ;;  %v613_v48 = vld [vmem:[#allocation2 + $0x8] sm:$0xf] }
 0x37a   : > { %621 = vrot.lane.b32.xlu1 %v613_v48, %s1240_s29  ;;  %v616_v2 = vcombine.high %v574_v7, %v574_v7  ;;  %v575_v3 = vld [vmem:[#allocation2 + $0x8] sm:$0xf]  ;;  %v594_v13 = vmul.f32 %v591_v10, %v574_v7  ;;  %v651_v17 = vmul.f32 %v648_v16, %v574_v7  ;;  %v689_v26 = vmul.f32 %v686_v25, %v574_v7 }
 0x37b   : > { %v595_v14 = vmul.f32 %v589_v8, %v575_v3  ;;  %v631_v15 = vld [vmem:[#allocation2 + $0x8] sm:$0xf] }
 0x37c   : > { %619 = vrot.lane.b32.xlu0 %v616_v2, %s1240_s29  ;;  %v652_v19 = vmul.f32 %v646_v11, %v631_v15  ;;  %v670_v20 = vld [vmem:[#allocation2 + $0x8] sm:$0xf]  ;;  %v598_v24 = vcombine.high %v594_v13, %v594_v13  ;;  %v655_v28 = vcombine.high %v651_v17, %v651_v17  ;;  %v693_v31 = vcombine.high %v689_v26, %v689_v26 }
 0x37d   : > { %v690_v23 = vmul.f32 %v684_v21, %v670_v20 }
 0x37e   : > { %617 = vrot.lane.b32.xlu1 %v574_v7, %s1240_s29 }
 0x380   : > { %599 = vrot.lane.b32.xlu0 %v594_v13, %s1249_s12 }
 0x382   : > { %603 = vrot.lane.b32.xlu1 %v595_v14, %s1249_s12 }
 0x384   : > { %656 = vrot.lane.b32.xlu0 %v651_v17, %s1248_s23 }
 0x386   : > { %660 = vrot.lane.b32.xlu1 %v652_v19, %s1248_s23 }
 0x388   : > { %737 = vrot.lane.b32.xlu0 %v732_v22, %s1246_s10 }
 0x38a   : > { %698 = vrot.lane.b32.xlu1 %v690_v23, %s1247_s11 }
 0x38c   : > { %601 = vrot.lane.b32.xlu0 %v598_v24, %s1249_s12  ;;  %s1177_s12 = scalar_lea.vmem %s1176_s17, 256 }
 0x38e   : > { %694 = vrot.lane.b32.xlu1 %v689_v26, %s1247_s11  ;;  %v847_v26 = vld [vmem:[#allocation3 + $0x40] sm:$0xff] }
 0x390   : > { %658 = vrot.lane.b32.xlu0 %v655_v28, %s1248_s23  ;;  %v848_v28 = vld [vmem:[#allocation3 + $0x48] sm:$0xff]  ;;  %s1171_s23 = scalar_lea.vmem %s1604_s7, 128 }
 0x391   : > { %p1172_p6 = scmp.ne.s32.totalorder %s1604_s7, %s1171_s23  ;;  %p1179_p2 = scmp.lt.s32.totalorder %s1177_s12, %s1171_s23 }
 0x392   : > { %792 = vrot.lane.b32.xlu1 %v789_v12, %s1251_s15 }
 0x393   : > { %p1173_p13 = pnand %p1172_p6, %p1660_p12  ;;  %p1180_p4 = por %p1179_p2, %p1178_p10 }
 0x394   : > { %696 = vrot.lane.b32.xlu0 %v693_v31, %s1247_s11  ;;  %s943_s11 = scalar_lea.sflag [#allocation6], %s1389_s13 }
 0x395   : > { %p1174_p7 = pneg %p1173_p13 }
 0x396   : > { %773 = vrot.lane.b32.xlu1 %v768_v32, %s1245_s8 }
 0x397   : > { %p1181_p5 = pnand %p1180_p4, %p1174_p7 }
 0x398   : > { %739 = vrot.lane.b32.xlu0 %v736_v34, %s1246_s10  ;;  %s1602_s10 = scalar_lea.hbm %s1651_s5, %s1059_s26 }
 0x39a   : > { %775 = vrot.lane.b32.xlu1 %v772_v36, %s1245_s8 }
 0x39c   : > { %794 = vrot.lane.b32.xlu0 %v786_v37, %s1251_s15 }
 0x39e   : > { %829 = vrot.lane.b32.xlu1 %v826_v38, %s1244_s9 }
 0x3a0   : > { %790 = vrot.lane.b32.xlu0 %v1539_v6, %s1251_s15 }
 0x3a2   : > { %827 = vrot.lane.b32.xlu1 %v822_v35, %s1244_s9 }
 0x3a4   : > { %831 = vrot.lane.b32.xlu0 %v823_v40, %s1244_s9 }
 0x3a8   : > { %859 = vperm.xlu0 %1135, %v573_v42  }
 0x3c8   : > { %v742_v43 = vpop.permute.xlu1 %741 }
 0x3cc   : > { %v778_v44 = vpop.permute.xlu0 %777 }
 0x3ec   : > { %v622_v45 = vpop.permute.xlu1 %621 }
 0x3ee   : > { %v620_v46 = vpop.permute.xlu0 %619 }
 0x3ef   : > { %v625_v47 = vsel %vm623_vm9, %v620_v46, %v622_v45 }
 0x3f0   : > { %629 = vst [vmem:[#allocation3 + $0x18] sm:$0xf] %v625_v47  ;;  %v618_v49 = vpop.permute.xlu1 %617 }
 0x3f1   : > { %v624_v50 = vsel %vm623_vm9, %v618_v49, %v620_v46 }
 0x3f2   : > { %628 = vst [vmem:[#allocation3 + $0x10] sm:$0xf] %v624_v50  ;;  %v600_v51 = vpop.permute.xlu0 %599 }
 0x3f4   : > { %v604_v52 = vpop.permute.xlu1 %603 }
 0x3f6   : > { %v657_v9 = vpop.permute.xlu0 %656 }
 0x3f7   : > { %v842_v1 = vld [vmem:[#allocation3 + $0x18] sm:$0xff] }
 0x3f8   : > { %v661_v53 = vpop.permute.xlu1 %660 }
 0x3f9   : > { %v841_v7 = vld [vmem:[#allocation3 + $0x10] sm:$0xff] }
 0x3fa   : > { %v738_v54 = vpop.permute.xlu0 %737 }
 0x3fc   : > { %v699_v55 = vpop.permute.xlu1 %698 }
 0x3fe   : > { %v602_v56 = vpop.permute.xlu0 %601 }
 0x3ff   : > { %v606_v57 = vsel %vm605_vm8, %v600_v51, %v602_v56  ;;  %v607_v58 = vsel %vm605_vm8, %v602_v56, %v604_v52 }
 0x400   : > { %610 = vst [vmem:[#allocation3] sm:$0xf] %v606_v57  ;;  %611 = vst [vmem:[#allocation3 + $0x8] sm:$0xf] %v607_v58  ;;  %v695_v59 = vpop.permute.xlu1 %694 }
 0x402   : > { %v659_v60 = vpop.permute.xlu0 %658 }
 0x403   : > { %v663_v61 = vsel %vm662_vm7, %v657_v9, %v659_v60  ;;  %v664_v62 = vsel %vm662_vm7, %v659_v60, %v661_v53 }
 0x404   : > { %667 = vst [vmem:[#allocation3 + $0x20] sm:$0xf] %v663_v61  ;;  %668 = vst [vmem:[#allocation3 + $0x28] sm:$0xf] %v664_v62  ;;  %v793_v63 = vpop.permute.xlu1 %792 }
 0x406   : > { %v697_v0 = vpop.permute.xlu0 %696 }
 0x407   : > { %v701_v4 = vsel %vm700_vm5, %v695_v59, %v697_v0  ;;  %v702_v5 = vsel %vm700_vm5, %v697_v0, %v699_v55  ;;  %v840_v6 = vld [vmem:[#allocation3 + $0x8] sm:$0xff]  ;;  %v839_v12 = vld [vmem:[#allocation3] sm:$0xff] }
 0x408   : > { %705 = vst [vmem:[#allocation3 + $0x30] sm:$0xf] %v701_v4  ;;  %706 = vst [vmem:[#allocation3 + $0x38] sm:$0xf] %v702_v5  ;;  %v774_v8 = vpop.permute.xlu1 %773  ;;  %v1060_v48 = vpack.c.bf16 %v842_v1, %v840_v6  ;;  %v1062_v2 = vpack.c.bf16 %v841_v7, %v839_v12 }
 0x40a   : > { %1061 = vmatprep.subr.bf16.mxu0 %v1060_v48  ;;  %v740_v3 = vpop.permute.xlu0 %739 }
 0x40b   : > { %v743_v10 = vsel %vm685_vm6, %v738_v54, %v740_v3  ;;  %v744_v11 = vsel %vm685_vm6, %v740_v3, %v742_v43  ;;  %1063 = vmatpush1.bf16.msra.mxu0 %v1062_v2  ;;  %v844_v17 = vld [vmem:[#allocation3 + $0x28] sm:$0xff]  ;;  %v843_v20 = vld [vmem:[#allocation3 + $0x20] sm:$0xff] }
 0x40c   : > { %747 = vst [vmem:[#allocation3 + $0x50] sm:$0xf] %v743_v10  ;;  %748 = vst [vmem:[#allocation3 + $0x58] sm:$0xf] %v744_v11  ;;  %v776_v13 = vpop.permute.xlu1 %775 }
 0x40d   : > { %v779_v14 = vsel %vm647_vm4, %v774_v8, %v776_v13  ;;  %v780_v15 = vsel %vm647_vm4, %v776_v13, %v778_v44  ;;  %v572_v44 = vld [vmem:[%s1648_s2] sm:$0xf] }
 0x40e   : > { %783 = vst [vmem:[#allocation3 + $0x60] sm:$0xf] %v779_v14  ;;  %784 = vst [vmem:[#allocation3 + $0x68] sm:$0xf] %v780_v15  ;;  %v795_v16 = vpop.permute.xlu0 %794 }
 0x40f   : > { %v798_v18 = vsel %vm796_vm10, %v793_v63, %v795_v16  ;;  %v846_v19 = vld [vmem:[#allocation3 + $0x38] sm:$0xff]  ;;  %v845_v21 = vld [vmem:[#allocation3 + $0x30] sm:$0xff] }
 0x410   : > { %802 = vst [vmem:[#allocation3 + $0x78] sm:$0xf] %v798_v18  ;;  %v830_v22 = vpop.permute.xlu1 %829  ;;  %v1064_v23 = vpack.c.bf16 %v846_v19, %v844_v17  ;;  %v1066_v24 = vpack.c.bf16 %v845_v21, %v843_v20 }
 0x412   : > { %1065 = vmatprep.subr.bf16.mxu0 %v1064_v23  ;;  %v791_v25 = vpop.permute.xlu0 %790 }
 0x413   : > { %v797_v27 = vsel %vm796_vm10, %v791_v25, %v793_v63  ;;  %1067 = vmatpush1.bf16.msra.mxu0 %v1066_v24  ;;  %v850_v29 = vld [vmem:[#allocation3 + $0x58] sm:$0xff]  ;;  %v849_v30 = vld [vmem:[#allocation3 + $0x50] sm:$0xff] }
 0x414   : > { %801 = vst [vmem:[#allocation3 + $0x70] sm:$0xf] %v797_v27  ;;  %v828_v31 = vpop.permute.xlu1 %827  ;;  %v1068_v32 = vpack.c.bf16 %v850_v29, %v848_v28  ;;  %v1070_v33 = vpack.c.bf16 %v849_v30, %v847_v26 }
 0x415   : > { %v833_v34 = vsel %vm590_vm3, %v828_v31, %v830_v22  ;;  %v852_v37 = vld [vmem:[#allocation3 + $0x68] sm:$0xff]  ;;  %v851_v40 = vld [vmem:[#allocation3 + $0x60] sm:$0xff] }
 0x416   : > { %837 = vst [vmem:[#allocation3 + $0x80] sm:$0xf] %v833_v34  ;;  %1069 = vmatprep.subr.bf16.mxu0 %v1068_v32  ;;  %v832_v35 = vpop.permute.xlu0 %831 }
 0x417   : > { %v834_v36 = vsel %vm590_vm3, %v830_v22, %v832_v35  ;;  %1071 = vmatpush1.bf16.msra.mxu0 %v1070_v33  ;;  %v854_v38 = vld [vmem:[#allocation3 + $0x78] sm:$0xff] }
 0x418   : > { %838 = vst [vmem:[#allocation3 + $0x88] sm:$0xf] %v834_v36  ;;  %v1072_v39 = vpack.c.bf16 %v854_v38, %v852_v37 }
 0x41a   : > { %1073 = vmatprep.subr.bf16.mxu0 %v1072_v39 }
 0x41b   : > { %v853_v41 = vld [vmem:[#allocation3 + $0x70] sm:$0xff] }
 0x41c   : > { %v1074_v42 = vpack.c.bf16 %v853_v41, %v851_v40 }
 0x41d   : > { %v855_v45 = vld [vmem:[#allocation3 + $0x80] sm:$0xff] }
 0x41e   : > { %1075 = vmatpush1.bf16.msra.mxu0 %v1074_v42 }
 0x41f   : > { %v856_v43 = vld [vmem:[#allocation3 + $0x88] sm:$0xff] }
 0x420   : > { %882 = vmatprep.subr.mxu0 %v856_v43 }
 0x422   : > { %883 = vmatpush1.msra.mxu0 %v855_v45 }
 0x423   : > { %1052 = vmatmul.mubr.msk.f32.vlgmr.msra.gmra.mrb[0].mxu0 %vm862_vm11, %v572_v44 }
 0x427   : > { %v860_v46 = vpop.permute.xlu0 %859 }
 0x4f6   : > { %v932_v47 = vpop.f32.mrb[0].mxu0 }
 0x4f7   : > { %v933_v49 = vadd.f32 %v932_v47, %v860_v46  ;;  %v934_v50 = vpop.f32.mrb[1].mxu0 }
 0x4f8   : > { %v935_v51 = vadd.f32 %v934_v50, %v860_v46 }
 0x4fa   : > { %v939_v52 = vcombine.low %v933_v49, %v935_v51 }
 0x4fc   : > { %941 = vst [vmem:[%s253_s28] sm:$0xff] %v939_v52 }
 0x4fd   : > { %1184 = shalt.err (!%p1181_p5)
}
 0x4fe   : > { %s1185_s13 = scalar_lea.hbm %s1602_s10, 128  ;;  %s1189_s14 = scalar_lea.hbm %s1651_s5, 256 }
 0x4ff   : > { %p1186_p8 = scmp.ne.s32.totalorder %s1602_s10, %s1185_s13  ;;  %p1190_p1 = scmp.lt.u32.totalorder %s1602_s10, %s1651_s5 }
 0x500   : > { %p1191_p3 = scmp.lt.u32.totalorder %s1189_s14, %s1185_s13  ;;  %p1193_p6 = scmp.lt.u32.totalorder %s1185_s13, %s1602_s10 }
 0x501   : > { %p1187_p9 = pnand %p1186_p8, %p1660_p12 }
 0x502   : > { %p1192_p11 = por %p1191_p3, %p1190_p1 }
 0x503   : > { %p1188_p0 = pneg %p1187_p9 }
 0x504   : > { %p1194_p13 = por %p1193_p6, %p1192_p11 }
 0x506   : > { %p1195_p7 = pnand %p1194_p13, %p1188_p0 }
 0x508   : > { %1198 = shalt.err (!%p1195_p7)
}
 0x509   : > { %1078 = dma.vmem_to_hbm [thread:$0]  (%p1660_p12), %s1604_s7, 128, %s1602_s10, %s943_s11  }
 0x50a PF: > { %s969_s26 = sand.u32 1, %s1225_s18   ;;  %p1661_p10 = scmp.ne.s32.totalorder %s1656_s6, 0 }
 0x50b   : > { %p1662_p2 = scmp.ge.s32.totalorder %s1237_s21, 2  ;;  %s970_s28 = scalar_lea.sflag [#allocation6], %s969_s26 }
 0x50d   : > { %p1085_p4 = pnand %p1662_p2, %p1661_p10 }
 0x50f   : > { %1220 = dma.done.wait (!%p1085_p4), %s970_s28, 128  }
 0x510   : > { %1222 = vsyncadd (!%p1085_p4), %s970_s28, 4294967168  ;;  %p18_p5 = scmp.ge.s32.totalorder %s1309_s24, 4   ;;  %s1663_s18 = smov %s1229_s19 }
 0x511   : > { %s1664_s19 = smov %s1233_s20  ;;  %s1665_s20 = smov %s1321_s27 }
 0x512   : > { %s1666_s21 = smov %s1309_s24  ;;  %20 = sbr.rel (!%p18_p5) target bundleno = 5 (0x5), region = 89 }
 0x519   :  { %975 = vsyncpa [#allocation5], 1 }
 0x51a   :  { %977 = vsyncpa [#allocation5 + $0x1], 1 }
 0x51b   :  { %978 = vsyncpa [#allocation6], 1 }
 0x51c   :  { %980 = vsyncpa [#allocation6 + $0x1], 1 }

</bundles_post_ra>
